<compile_context>
chip_gen: v5e
topology: v5e:2x2
jax: 0.10.0
libtpu: 0.0.40
codegen_flags: <defaults>
</compile_context>

<pallas_src>
import functools

import jax
import jax.numpy as jnp
from jax.experimental import pallas as pl
from jax.experimental.pallas import tpu as pltpu


_ACC_VMEM_BUDGET = 8 << 20        # persistent accumulators (x0, m1_acc, per-row sums)
_BLOCK_F32_BUDGET = 2 << 20       # padded f32 footprint of one streamed input slab
_STEP_TARGET_BYTES = 512 << 10    # useful input bytes per grid step


def _round_up(x, m):
    return (x + m - 1) // m * m


def _vmem_tile_bytes(rows, cols, itemsize):
    """Approximate VMEM footprint of a (rows, cols) array with (8, 128) padding."""
    return _round_up(rows, 8) * _round_up(cols, 128) * itemsize


def _choose_t_tile(t, k1, k2):
    def acc_bytes(tt):
        return 2 * _vmem_tile_bytes(tt, k2, 4) + 5 * _vmem_tile_bytes(tt, 1, 4)

    tt = t
    if acc_bytes(t) > _ACC_VMEM_BUDGET and t % 8 == 0:
        for cand in range(t - 8, 0, -8):          # multiples of 8 that divide t
            if t % cand == 0 and acc_bytes(cand) <= _ACC_VMEM_BUDGET:
                tt = cand
                break
    # Split rows in two so the "parallel" grid axis can feed both v7x
    # TensorCores once the streamed volume is large enough to amortize it.
    if tt == t and t % 16 == 0 and t * k1 * k2 >= (1 << 21):
        tt = t // 2
    return tt


def _choose_block_k1(t_tile, k1, k2, in_itemsize):
    per_block_padded_f32 = _vmem_tile_bytes(t_tile, k2, 4)
    per_block_useful = t_tile * k2 * in_itemsize
    bk1_vmem = max(1, _BLOCK_F32_BUDGET // per_block_padded_f32)
    bk1_amort = max(1, -(-_STEP_TARGET_BYTES // per_block_useful))
    return max(1, min(k1, bk1_vmem, bk1_amort))


def _label_cluster_loss_kernel(x_ref, o_ref,
                               x0_ref, cm0_ref, m1_acc,
                               intra_acc, dualsq_acc, cm_acc, cmsq_acc,
                               *, k1, k2, bk1, n_k_steps):
    """Grid = (t_tiles, k1_steps).  One step processes bk1 class-0 blocks of one
    row tile.  Persistent scratch (re-initialised at ki == 0 for each row tile):

      x0_ref     (tt, k2) f32 : class-0 block 0 of this row tile (numerical shift)
      cm0_ref    (tt, 1)  f32 : per-row mean of block 0
      m1_acc     (tt, k2) f32 : running sum over blocks of (block - x0)
      intra_acc  (tt, 1)  f32 : running per-row intra-class variance (centered, exact)
      dualsq_acc (tt, 1)  f32 : running per-row sum of (block - x0)^2
      cm_acc     (tt, 1)  f32 : running sum of per-block row means (shifted)
      cmsq_acc   (tt, 1)  f32 : running sum of squared per-block row means (shifted)
    """
    ki = pl.program_id(1)

    blk = x_ref[...].astype(jnp.float32)                  # (bk1, tt, k2)

    @pl.when(ki == 0)
    def _init():
        x0 = blk[0]                                        # class-0 block 0 (always valid)
        x0_ref[...] = x0
        cm0_ref[...] = jnp.mean(x0, axis=1, keepdims=True)
        m1_acc[...] = jnp.zeros_like(m1_acc)
        intra_acc[...] = jnp.zeros_like(intra_acc)
        dualsq_acc[...] = jnp.zeros_like(dualsq_acc)
        cm_acc[...] = jnp.zeros_like(cm_acc)
        cmsq_acc[...] = jnp.zeros_like(cmsq_acc)

    # Mask the padded class-0 blocks of a partial last step (k1 % bk1 != 0).
    blk_idx = jax.lax.broadcasted_iota(jnp.int32, (bk1, 1, 1), 0) + ki * bk1
    valid = blk_idx < k1                                   # (bk1, 1, 1) bool

    # Per-block row means over the k2 class-1 labels.
    cm = jnp.mean(blk, axis=2, keepdims=True)              # (bk1, tt, 1)

    # intra-class variance: centered per block -> exact, no cancellation.
    c = jnp.where(valid, blk - cm, 0.0)
    intra_acc[...] += jnp.sum(jnp.sum(c * c, axis=2, keepdims=True), axis=0)

    # Remaining terms: single-pass sums, shifted by block 0 to stay well
    # conditioned.  Only m1_acc is a full-width tile store.
    d = jnp.where(valid, blk - x0_ref[...][None], 0.0)     # (bk1, tt, k2)
    m1_acc[...] += jnp.sum(d, axis=0)
    dualsq_acc[...] += jnp.sum(jnp.sum(d * d, axis=2, keepdims=True), axis=0)

    cm_d = jnp.where(valid, cm - cm0_ref[...][None], 0.0)  # (bk1, tt, 1)
    cm_acc[...] += jnp.sum(cm_d, axis=0)
    cmsq_acc[...] += jnp.sum(cm_d * cm_d, axis=0)

    @pl.when(ki == n_k_steps - 1)
    def _finalize():
        k1f = jnp.float32(k1)
        k2f = jnp.float32(k2)
        inv_k1 = jnp.float32(1.0 / k1)

        m1s = m1_acc[...] * inv_k1                 # (tt, k2): column means minus x0
        m1 = m1s + x0_ref[...]                     # exact per-(row, j) mean over blocks
        gshift = cm_acc[...] * inv_k1              # (tt, 1): global row mean minus cm0
        g = gshift + cm0_ref[...]                  # (tt, 1): global per-row mean

        intra_rows = intra_acc[...]                                            # (tt, 1)
        inter_rows = k2f * (cmsq_acc[...] - k1f * gshift * gshift)             # (tt, 1)
        dual_intra_rows = (dualsq_acc[...]
                           - k1f * jnp.sum(m1s * m1s, axis=1, keepdims=True))  # (tt, 1)
        dm = m1 - g                                                            # centered, exact
        dual_inter_rows = k1f * jnp.sum(dm * dm, axis=1, keepdims=True)        # (tt, 1)

        # Pack the four per-row partial terms into the (tt, 4) output block.
        lane = jax.lax.broadcasted_iota(jnp.int32, o_ref.shape, 1)
        o_ref[...] = (jnp.where(lane == 0, intra_rows, 0.0)
                      + jnp.where(lane == 1, inter_rows, 0.0)
                      + jnp.where(lane == 2, dual_intra_rows, 0.0)
                      + jnp.where(lane == 3, dual_inter_rows, 0.0))


def label_cluster_loss(pairwise_label_emb, dim_label_emb, *, block_k1=None, block_t=None):
    """Pallas implementation of LabelClusterLoss.forward(pairwise_label_emb, t)."""
    tk1, k2 = pairwise_label_emb.shape
    t = int(dim_label_emb)
    if tk1 % t != 0:
        raise ValueError(
            f"dim_label_emb={t} must divide pairwise_label_emb.shape[0]={tk1}")
    k1 = tk1 // t
    in_itemsize = pairwise_label_emb.dtype.itemsize

    # Free row-major view: block i lives at x3[i]; trailing dims equal the full
    # array dims so no (8, 128) alignment issues on the input BlockSpec.
    # TODO(synk): for k2 << 128 a lane-dense repack (t*k2 flattened into lanes,
    # k2-segment reductions via an MXU ones-matmul) would lift VMEM-side lane
    # utilisation from k2/128; not done here to keep the kernel shape-generic.
    x3 = pairwise_label_emb.reshape(k1, t, k2)

    t_tile = int(block_t) if block_t is not None else _choose_t_tile(t, k1, k2)
    if t % t_tile != 0 or (t_tile != t and t_tile % 8 != 0):
        raise ValueError(f"block_t={t_tile} must divide t={t} and be a multiple of 8")
    n_t_tiles = t // t_tile

    if block_k1 is not None:
        bk1 = max(1, min(int(block_k1), k1))
    else:
        bk1 = _choose_block_k1(t_tile, k1, k2, in_itemsize)
    n_k_steps = -(-k1 // bk1)

    # VMEM budget for the chosen tiling (holds on v5e/v6e/v7x): double-buffered
    # input slabs + f32 intermediates + persistent accumulators + output block.
    block_in_bytes = bk1 * _vmem_tile_bytes(t_tile, k2, in_itemsize)
    block_f32_bytes = bk1 * _vmem_tile_bytes(t_tile, k2, 4)
    acc_bytes = 2 * _vmem_tile_bytes(t_tile, k2, 4) + 5 * _vmem_tile_bytes(t_tile, 1, 4)
    out_bytes = 2 * _vmem_tile_bytes(t_tile, 4, 4)
    footprint = 2 * block_in_bytes + 4 * block_f32_bytes + acc_bytes + out_bytes
    vmem_limit = int(min(48 << 20, max(footprint + (4 << 20), 16 << 20)))

    cost = pl.CostEstimate(
        flops=8 * t * k1 * k2,
        transcendentals=0,
        bytes_accessed=t * k1 * k2 * in_itemsize + t * 4 * 4)

    kernel = functools.partial(_label_cluster_loss_kernel,
                               k1=k1, k2=k2, bk1=bk1, n_k_steps=n_k_steps)

    parts = pl.pallas_call(
        kernel,
        out_shape=jax.ShapeDtypeStruct((t, 4), jnp.float32),
        grid=(n_t_tiles, n_k_steps),
        in_specs=[pl.BlockSpec((bk1, t_tile, k2), lambda ti, ki: (ki, ti, 0))],
        out_specs=pl.BlockSpec((t_tile, 4), lambda ti, ki: (ti, 0)),
        scratch_shapes=[
            pltpu.VMEM((t_tile, k2), jnp.float32),   # x0_ref
            pltpu.VMEM((t_tile, 1), jnp.float32),    # cm0_ref
            pltpu.VMEM((t_tile, k2), jnp.float32),   # m1_acc
            pltpu.VMEM((t_tile, 1), jnp.float32),    # intra_acc
            pltpu.VMEM((t_tile, 1), jnp.float32),    # dualsq_acc
            pltpu.VMEM((t_tile, 1), jnp.float32),    # cm_acc
            pltpu.VMEM((t_tile, 1), jnp.float32),    # cmsq_acc
        ],
        compiler_params=pltpu.CompilerParams(
            dimension_semantics=("parallel", "arbitrary"),
            vmem_limit_bytes=vmem_limit),
        cost_estimate=cost,
    )(x3)

    # Tiny scalar epilogue: all four variance terms are separable over rows.
    sums = jnp.sum(parts, axis=0)                          # (4,)
    intra, inter, dual_intra, dual_inter = sums[0], sums[1], sums[2], sums[3]
    loss = 0.5 * (intra / inter + dual_intra / dual_inter)
    return loss / jnp.float32(k1 * k2)


def _reference_loss(x, t):
    """Pure-JAX reference mirroring the PyTorch code (centered form)."""
    tk1, k2 = x.shape
    k1 = tk1 // t
    x3 = x.astype(jnp.float32).reshape(k1, t, k2)
    cm = jnp.mean(x3, axis=2, keepdims=True)                  # (k1, t, 1)
    intra = jnp.sum((x3 - cm) ** 2)
    m0 = cm[..., 0]                                           # (k1, t)
    inter = k2 * jnp.sum((m0 - jnp.mean(m0, axis=0, keepdims=True)) ** 2)
    m1 = jnp.mean(x3, axis=0)                                 # (t, k2)
    dual_intra = jnp.sum((x3 - m1[None]) ** 2)
    dual_inter = k1 * jnp.sum((m1 - jnp.mean(m1, axis=1, keepdims=True)) ** 2)
    return 0.5 * (intra / inter + dual_intra / dual_inter) / (k1 * k2)


if __name__ == "__main__":
    key_a, key_b = jax.random.split(jax.random.PRNGKey(0))

    # Small deterministic example: t=8 latent dims, k1=4 class-0 labels,
    # k2=8 class-1 labels -> pairwise_label_emb shape (32, 8).
    t, k1, k2 = 8, 4, 8
    pairwise_label_emb = jax.random.normal(key_a, (t * k1, k2), dtype=jnp.float32)

    loss = jax.block_until_ready(label_cluster_loss(pairwise_label_emb, t))
    ref = _reference_loss(pairwise_label_emb, t)
    assert jnp.allclose(loss, ref, rtol=3e-4, atol=1e-6), (loss, ref)

    # Exercise the general paths: 2 row tiles, 3 k1 steps with a masked partial
    # last step (k1=5, block_k1=2).
    t2, k1_2, k2_2 = 16, 5, 256
    x2 = jax.random.normal(key_b, (t2 * k1_2, k2_2), dtype=jnp.float32)
    loss2 = jax.block_until_ready(
        label_cluster_loss(x2, t2, block_k1=2, block_t=8))
    ref2 = _reference_loss(x2, t2)
    assert jnp.allclose(loss2, ref2, rtol=3e-4, atol=1e-6), (loss2, ref2)

    print("KERNEL_OK")
</pallas_src>

<mosaic_0001>
module attributes {stable_mosaic.version = 11 : i64} {
  func.func @_label_cluster_loss_kernel(%arg0: i32, %arg1: i32, %arg2: memref<4x8x8xf32, #tpu.memory_space<vmem>>, %arg3: memref<8x4xf32, #tpu.memory_space<vmem>>, %arg4: memref<8x8xf32, #tpu.memory_space<vmem>>, %arg5: memref<8x1xf32, #tpu.memory_space<vmem>>, %arg6: memref<8x8xf32, #tpu.memory_space<vmem>>, %arg7: memref<8x1xf32, #tpu.memory_space<vmem>>, %arg8: memref<8x1xf32, #tpu.memory_space<vmem>>, %arg9: memref<8x1xf32, #tpu.memory_space<vmem>>, %arg10: memref<8x1xf32, #tpu.memory_space<vmem>>) attributes {dimension_semantics = [#tpu.dimension_semantics<parallel>, #tpu.dimension_semantics<arbitrary>], iteration_bounds = array<i64: 1, 1>, scalar_prefetch = 0 : i64, scratch_operands = 7 : i64, tpu.core_type = #tpu.core_type<tc>, window_params = [{transform_indices = @transform_0, window_bounds = array<i64: 4, 8, 8>}, {transform_indices = @transform_1, window_bounds = array<i64: 8, 4>}]} {
    %c0 = arith.constant 0 : index
    %c0_0 = arith.constant 0 : index
    %c0_1 = arith.constant 0 : index
    %0 = vector.load %arg2[%c0, %c0_0, %c0_1] : memref<4x8x8xf32, #tpu.memory_space<vmem>>, vector<4x8x8xf32>
    %c0_i32 = arith.constant 0 : i32
    %1 = arith.cmpi eq, %arg1, %c0_i32 : i32
    %2 = arith.extui %1 : i1 to i32
    %c0_i32_2 = arith.constant 0 : i32
    %3 = arith.cmpi ne, %2, %c0_i32_2 : i32
    scf.if %3 {
      %66 = vector.extract_strided_slice %0 {offsets = [0, 0, 0], sizes = [1, 8, 8], strides = [1, 1, 1]} : vector<4x8x8xf32> to vector<1x8x8xf32>
      %67 = vector.shape_cast %66 : vector<1x8x8xf32> to vector<8x8xf32>
      %c0_41 = arith.constant 0 : index
      %c0_42 = arith.constant 0 : index
      %68 = vector.load %arg4[%c0_41, %c0_42] : memref<8x8xf32, #tpu.memory_space<vmem>>, vector<8x8xf32>
      tpu.vector_store %arg4[%c0_41, %c0_42], %67 {strides = array<i32>} : memref<8x8xf32, #tpu.memory_space<vmem>>, vector<8x8xf32>,
      %cst_43 = arith.constant dense<0.000000e+00> : vector<8xf32>
      %69 = vector.multi_reduction <add>, %67, %cst_43 [1] : vector<8x8xf32> to vector<8xf32>
      %70 = vector.shape_cast %69 : vector<8xf32> to vector<8x1xf32>
      %cst_44 = arith.constant 8.000000e+00 : f32
      %71 = vector.broadcast %cst_44 : f32 to vector<8x1xf32>
      %72 = arith.divf %70, %71 : vector<8x1xf32>
      %c0_45 = arith.constant 0 : index
      %c0_46 = arith.constant 0 : index
      %73 = vector.load %arg5[%c0_45, %c0_46] : memref<8x1xf32, #tpu.memory_space<vmem>>, vector<8x1xf32>
      tpu.vector_store %arg5[%c0_45, %c0_46], %72 {strides = array<i32>} : memref<8x1xf32, #tpu.memory_space<vmem>>, vector<8x1xf32>,
      %cst_47 = arith.constant 0.000000e+00 : f32
      %74 = vector.broadcast %cst_47 : f32 to vector<8x8xf32>
      %c0_48 = arith.constant 0 : index
      %c0_49 = arith.constant 0 : index
      %75 = vector.load %arg6[%c0_48, %c0_49] : memref<8x8xf32, #tpu.memory_space<vmem>>, vector<8x8xf32>
      tpu.vector_store %arg6[%c0_48, %c0_49], %74 {strides = array<i32>} : memref<8x8xf32, #tpu.memory_space<vmem>>, vector<8x8xf32>,
      %cst_50 = arith.constant 0.000000e+00 : f32
      %76 = vector.broadcast %cst_50 : f32 to vector<8x1xf32>
      %c0_51 = arith.constant 0 : index
      %c0_52 = arith.constant 0 : index
      %77 = vector.load %arg7[%c0_51, %c0_52] : memref<8x1xf32, #tpu.memory_space<vmem>>, vector<8x1xf32>
      tpu.vector_store %arg7[%c0_51, %c0_52], %76 {strides = array<i32>} : memref<8x1xf32, #tpu.memory_space<vmem>>, vector<8x1xf32>,
      %cst_53 = arith.constant 0.000000e+00 : f32
      %78 = vector.broadcast %cst_53 : f32 to vector<8x1xf32>
      %c0_54 = arith.constant 0 : index
      %c0_55 = arith.constant 0 : index
      %79 = vector.load %arg8[%c0_54, %c0_55] : memref<8x1xf32, #tpu.memory_space<vmem>>, vector<8x1xf32>
      tpu.vector_store %arg8[%c0_54, %c0_55], %78 {strides = array<i32>} : memref<8x1xf32, #tpu.memory_space<vmem>>, vector<8x1xf32>,
      %cst_56 = arith.constant 0.000000e+00 : f32
      %80 = vector.broadcast %cst_56 : f32 to vector<8x1xf32>
      %c0_57 = arith.constant 0 : index
      %c0_58 = arith.constant 0 : index
      %81 = vector.load %arg9[%c0_57, %c0_58] : memref<8x1xf32, #tpu.memory_space<vmem>>, vector<8x1xf32>
      tpu.vector_store %arg9[%c0_57, %c0_58], %80 {strides = array<i32>} : memref<8x1xf32, #tpu.memory_space<vmem>>, vector<8x1xf32>,
      %cst_59 = arith.constant 0.000000e+00 : f32
      %82 = vector.broadcast %cst_59 : f32 to vector<8x1xf32>
      %c0_60 = arith.constant 0 : index
      %c0_61 = arith.constant 0 : index
      %83 = vector.load %arg10[%c0_60, %c0_61] : memref<8x1xf32, #tpu.memory_space<vmem>>, vector<8x1xf32>
      tpu.vector_store %arg10[%c0_60, %c0_61], %82 {strides = array<i32>} : memref<8x1xf32, #tpu.memory_space<vmem>>, vector<8x1xf32>,
    } else {
    }
    %4 = tpu.iota {dimensions = array<i32: 0>} : vector<4x1x1xi32>
    %c4_i32 = arith.constant 4 : i32
    %5 = arith.muli %arg1, %c4_i32 : i32
    %6 = vector.broadcast %5 : i32 to vector<4x1x1xi32>
    %7 = arith.addi %4, %6 : vector<4x1x1xi32>
    %c4_i32_3 = arith.constant 4 : i32
    %8 = vector.broadcast %c4_i32_3 : i32 to vector<4x1x1xi32>
    %9 = arith.cmpi slt, %7, %8 : vector<4x1x1xi32>
    %cst = arith.constant dense<0.000000e+00> : vector<4x8xf32>
    %10 = vector.multi_reduction <add>, %0, %cst [2] : vector<4x8x8xf32> to vector<4x8xf32>
    %11 = vector.shape_cast %10 : vector<4x8xf32> to vector<4x8x1xf32>
    %cst_4 = arith.constant 8.000000e+00 : f32
    %12 = vector.broadcast %cst_4 : f32 to vector<4x8x1xf32>
    %13 = arith.divf %11, %12 : vector<4x8x1xf32>
    %14 = vector.broadcast %13 : vector<4x8x1xf32> to vector<4x8x8xf32>
    %15 = arith.subf %0, %14 : vector<4x8x8xf32>
    %cst_5 = arith.constant 0.000000e+00 : f32
    %16 = vector.shape_cast %9 : vector<4x1x1xi1> to vector<4x1x1xi1>
    %17 = vector.broadcast %16 : vector<4x1x1xi1> to vector<4x8x8xi1>
    %18 = vector.broadcast %cst_5 : f32 to vector<4x8x8xf32>
    %19 = arith.select %17, %15, %18 : vector<4x8x8xi1>, vector<4x8x8xf32>
    %c0_6 = arith.constant 0 : index
    %c0_7 = arith.constant 0 : index
    %20 = vector.load %arg7[%c0_6, %c0_7] : memref<8x1xf32, #tpu.memory_space<vmem>>, vector<8x1xf32>
    %21 = arith.mulf %19, %19 : vector<4x8x8xf32>
    %cst_8 = arith.constant dense<0.000000e+00> : vector<4x8xf32>
    %22 = vector.multi_reduction <add>, %21, %cst_8 [2] : vector<4x8x8xf32> to vector<4x8xf32>
    %23 = vector.shape_cast %22 : vector<4x8xf32> to vector<4x8x1xf32>
    %cst_9 = arith.constant dense<0.000000e+00> : vector<8x1xf32>
    %24 = vector.multi_reduction <add>, %23, %cst_9 [0] : vector<4x8x1xf32> to vector<8x1xf32>
    %25 = arith.addf %20, %24 : vector<8x1xf32>
    %c0_10 = arith.constant 0 : index
    %c0_11 = arith.constant 0 : index
    %26 = vector.load %arg7[%c0_10, %c0_11] : memref<8x1xf32, #tpu.memory_space<vmem>>, vector<8x1xf32>
    tpu.vector_store %arg7[%c0_10, %c0_11], %25 {strides = array<i32>} : memref<8x1xf32, #tpu.memory_space<vmem>>, vector<8x1xf32>,
    %c0_12 = arith.constant 0 : index
    %c0_13 = arith.constant 0 : index
    %27 = vector.load %arg4[%c0_12, %c0_13] : memref<8x8xf32, #tpu.memory_space<vmem>>, vector<8x8xf32>
    %28 = vector.shape_cast %27 : vector<8x8xf32> to vector<1x8x8xf32>
    %29 = vector.broadcast %28 : vector<1x8x8xf32> to vector<4x8x8xf32>
    %30 = arith.subf %0, %29 : vector<4x8x8xf32>
    %cst_14 = arith.constant 0.000000e+00 : f32
    %31 = vector.shape_cast %9 : vector<4x1x1xi1> to vector<4x1x1xi1>
    %32 = vector.broadcast %31 : vector<4x1x1xi1> to vector<4x8x8xi1>
    %33 = vector.broadcast %cst_14 : f32 to vector<4x8x8xf32>
    %34 = arith.select %32, %30, %33 : vector<4x8x8xi1>, vector<4x8x8xf32>
    %c0_15 = arith.constant 0 : index
    %c0_16 = arith.constant 0 : index
    %35 = vector.load %arg6[%c0_15, %c0_16] : memref<8x8xf32, #tpu.memory_space<vmem>>, vector<8x8xf32>
    %cst_17 = arith.constant dense<0.000000e+00> : vector<8x8xf32>
    %36 = vector.multi_reduction <add>, %34, %cst_17 [0] : vector<4x8x8xf32> to vector<8x8xf32>
    %37 = arith.addf %35, %36 : vector<8x8xf32>
    %c0_18 = arith.constant 0 : index
    %c0_19 = arith.constant 0 : index
    %38 = vector.load %arg6[%c0_18, %c0_19] : memref<8x8xf32, #tpu.memory_space<vmem>>, vector<8x8xf32>
    tpu.vector_store %arg6[%c0_18, %c0_19], %37 {strides = array<i32>} : memref<8x8xf32, #tpu.memory_space<vmem>>, vector<8x8xf32>,
    %c0_20 = arith.constant 0 : index
    %c0_21 = arith.constant 0 : index
    %39 = vector.load %arg8[%c0_20, %c0_21] : memref<8x1xf32, #tpu.memory_space<vmem>>, vector<8x1xf32>
    %40 = arith.mulf %34, %34 : vector<4x8x8xf32>
    %cst_22 = arith.constant dense<0.000000e+00> : vector<4x8xf32>
    %41 = vector.multi_reduction <add>, %40, %cst_22 [2] : vector<4x8x8xf32> to vector<4x8xf32>
    %42 = vector.shape_cast %41 : vector<4x8xf32> to vector<4x8x1xf32>
    %cst_23 = arith.constant dense<0.000000e+00> : vector<8x1xf32>
    %43 = vector.multi_reduction <add>, %42, %cst_23 [0] : vector<4x8x1xf32> to vector<8x1xf32>
    %44 = arith.addf %39, %43 : vector<8x1xf32>
    %c0_24 = arith.constant 0 : index
    %c0_25 = arith.constant 0 : index
    %45 = vector.load %arg8[%c0_24, %c0_25] : memref<8x1xf32, #tpu.memory_space<vmem>>, vector<8x1xf32>
    tpu.vector_store %arg8[%c0_24, %c0_25], %44 {strides = array<i32>} : memref<8x1xf32, #tpu.memory_space<vmem>>, vector<8x1xf32>,
    %c0_26 = arith.constant 0 : index
    %c0_27 = arith.constant 0 : index
    %46 = vector.load %arg5[%c0_26, %c0_27] : memref<8x1xf32, #tpu.memory_space<vmem>>, vector<8x1xf32>
    %47 = vector.shape_cast %46 : vector<8x1xf32> to vector<1x8x1xf32>
    %48 = vector.broadcast %47 : vector<1x8x1xf32> to vector<4x8x1xf32>
    %49 = arith.subf %13, %48 : vector<4x8x1xf32>
    %cst_28 = arith.constant 0.000000e+00 : f32
    %50 = vector.shape_cast %9 : vector<4x1x1xi1> to vector<4x1x1xi1>
    %51 = vector.broadcast %50 : vector<4x1x1xi1> to vector<4x8x1xi1>
    %52 = vector.broadcast %cst_28 : f32 to vector<4x8x1xf32>
    %53 = arith.select %51, %49, %52 : vector<4x8x1xi1>, vector<4x8x1xf32>
    %c0_29 = arith.constant 0 : index
    %c0_30 = arith.constant 0 : index
    %54 = vector.load %arg9[%c0_29, %c0_30] : memref<8x1xf32, #tpu.memory_space<vmem>>, vector<8x1xf32>
    %cst_31 = arith.constant dense<0.000000e+00> : vector<8x1xf32>
    %55 = vector.multi_reduction <add>, %53, %cst_31 [0] : vector<4x8x1xf32> to vector<8x1xf32>
    %56 = arith.addf %54, %55 : vector<8x1xf32>
    %c0_32 = arith.constant 0 : index
    %c0_33 = arith.constant 0 : index
    %57 = vector.load %arg9[%c0_32, %c0_33] : memref<8x1xf32, #tpu.memory_space<vmem>>, vector<8x1xf32>
    tpu.vector_store %arg9[%c0_32, %c0_33], %56 {strides = array<i32>} : memref<8x1xf32, #tpu.memory_space<vmem>>, vector<8x1xf32>,
    %c0_34 = arith.constant 0 : index
    %c0_35 = arith.constant 0 : index
    %58 = vector.load %arg10[%c0_34, %c0_35] : memref<8x1xf32, #tpu.memory_space<vmem>>, vector<8x1xf32>
    %59 = arith.mulf %53, %53 : vector<4x8x1xf32>
    %cst_36 = arith.constant dense<0.000000e+00> : vector<8x1xf32>
    %60 = vector.multi_reduction <add>, %59, %cst_36 [0] : vector<4x8x1xf32> to vector<8x1xf32>
    %61 = arith.addf %58, %60 : vector<8x1xf32>
    %c0_37 = arith.constant 0 : index
    %c0_38 = arith.constant 0 : index
    %62 = vector.load %arg10[%c0_37, %c0_38] : memref<8x1xf32, #tpu.memory_space<vmem>>, vector<8x1xf32>
    tpu.vector_store %arg10[%c0_37, %c0_38], %61 {strides = array<i32>} : memref<8x1xf32, #tpu.memory_space<vmem>>, vector<8x1xf32>,
    %c0_i32_39 = arith.constant 0 : i32
    %63 = arith.cmpi eq, %arg1, %c0_i32_39 : i32
    %64 = arith.extui %63 : i1 to i32
    %c0_i32_40 = arith.constant 0 : i32
    %65 = arith.cmpi ne, %64, %c0_i32_40 : i32
    scf.if %65 {
      %c0_41 = arith.constant 0 : index
      %c0_42 = arith.constant 0 : index
      %66 = vector.load %arg6[%c0_41, %c0_42] : memref<8x8xf32, #tpu.memory_space<vmem>>, vector<8x8xf32>
      %cst_43 = arith.constant 2.500000e-01 : f32
      %67 = vector.broadcast %cst_43 : f32 to vector<8x8xf32>
      %68 = arith.mulf %66, %67 : vector<8x8xf32>
      %c0_44 = arith.constant 0 : index
      %c0_45 = arith.constant 0 : index
      %69 = vector.load %arg4[%c0_44, %c0_45] : memref<8x8xf32, #tpu.memory_space<vmem>>, vector<8x8xf32>
      %70 = arith.addf %68, %69 : vector<8x8xf32>
      %c0_46 = arith.constant 0 : index
      %c0_47 = arith.constant 0 : index
      %71 = vector.load %arg9[%c0_46, %c0_47] : memref<8x1xf32, #tpu.memory_space<vmem>>, vector<8x1xf32>
      %cst_48 = arith.constant 2.500000e-01 : f32
      %72 = vector.broadcast %cst_48 : f32 to vector<8x1xf32>
      %73 = arith.mulf %71, %72 : vector<8x1xf32>
      %c0_49 = arith.constant 0 : index
      %c0_50 = arith.constant 0 : index
      %74 = vector.load %arg5[%c0_49, %c0_50] : memref<8x1xf32, #tpu.memory_space<vmem>>, vector<8x1xf32>
      %75 = arith.addf %73, %74 : vector<8x1xf32>
      %c0_51 = arith.constant 0 : index
      %c0_52 = arith.constant 0 : index
      %76 = vector.load %arg7[%c0_51, %c0_52] : memref<8x1xf32, #tpu.memory_space<vmem>>, vector<8x1xf32>
      %c0_53 = arith.constant 0 : index
      %c0_54 = arith.constant 0 : index
      %77 = vector.load %arg10[%c0_53, %c0_54] : memref<8x1xf32, #tpu.memory_space<vmem>>, vector<8x1xf32>
      %cst_55 = arith.constant 4.000000e+00 : f32
      %78 = vector.broadcast %cst_55 : f32 to vector<8x1xf32>
      %79 = arith.mulf %78, %73 : vector<8x1xf32>
      %80 = arith.mulf %79, %73 : vector<8x1xf32>
      %81 = arith.subf %77, %80 : vector<8x1xf32>
      %cst_56 = arith.constant 8.000000e+00 : f32
      %82 = vector.broadcast %cst_56 : f32 to vector<8x1xf32>
      %83 = arith.mulf %82, %81 : vector<8x1xf32>
      %c0_57 = arith.constant 0 : index
      %c0_58 = arith.constant 0 : index
      %84 = vector.load %arg8[%c0_57, %c0_58] : memref<8x1xf32, #tpu.memory_space<vmem>>, vector<8x1xf32>
      %85 = arith.mulf %68, %68 : vector<8x8xf32>
      %cst_59 = arith.constant dense<0.000000e+00> : vector<8xf32>
      %86 = vector.multi_reduction <add>, %85, %cst_59 [1] : vector<8x8xf32> to vector<8xf32>
      %87 = vector.shape_cast %86 : vector<8xf32> to vector<8x1xf32>
      %cst_60 = arith.constant 4.000000e+00 : f32
      %88 = vector.broadcast %cst_60 : f32 to vector<8x1xf32>
      %89 = arith.mulf %88, %87 : vector<8x1xf32>
      %90 = arith.subf %84, %89 : vector<8x1xf32>
      %91 = vector.broadcast %75 : vector<8x1xf32> to vector<8x8xf32>
      %92 = arith.subf %70, %91 : vector<8x8xf32>
      %93 = arith.mulf %92, %92 : vector<8x8xf32>
      %cst_61 = arith.constant dense<0.000000e+00> : vector<8xf32>
      %94 = vector.multi_reduction <add>, %93, %cst_61 [1] : vector<8x8xf32> to vector<8xf32>
      %95 = vector.shape_cast %94 : vector<8xf32> to vector<8x1xf32>
      %cst_62 = arith.constant 4.000000e+00 : f32
      %96 = vector.broadcast %cst_62 : f32 to vector<8x1xf32>
      %97 = arith.mulf %96, %95 : vector<8x1xf32>
      %98 = tpu.iota {dimensions = array<i32: 1>} : vector<8x4xi32>
      %c0_i32_63 = arith.constant 0 : i32
      %99 = vector.broadcast %c0_i32_63 : i32 to vector<8x4xi32>
      %100 = arith.cmpi eq, %98, %99 : vector<8x4xi32>
      %cst_64 = arith.constant 0.000000e+00 : f32
      %101 = vector.shape_cast %76 : vector<8x1xf32> to vector<8x1xf32>
      %102 = vector.broadcast %101 : vector<8x1xf32> to vector<8x4xf32>
      %103 = vector.broadcast %cst_64 : f32 to vector<8x4xf32>
      %104 = arith.select %100, %102, %103 : vector<8x4xi1>, vector<8x4xf32>
      %c1_i32 = arith.constant 1 : i32
      %105 = vector.broadcast %c1_i32 : i32 to vector<8x4xi32>
      %106 = arith.cmpi eq, %98, %105 : vector<8x4xi32>
      %cst_65 = arith.constant 0.000000e+00 : f32
      %107 = vector.shape_cast %83 : vector<8x1xf32> to vector<8x1xf32>
      %108 = vector.broadcast %107 : vector<8x1xf32> to vector<8x4xf32>
      %109 = vector.broadcast %cst_65 : f32 to vector<8x4xf32>
      %110 = arith.select %106, %108, %109 : vector<8x4xi1>, vector<8x4xf32>
      %111 = arith.addf %104, %110 : vector<8x4xf32>
      %c2_i32 = arith.constant 2 : i32
      %112 = vector.broadcast %c2_i32 : i32 to vector<8x4xi32>
      %113 = arith.cmpi eq, %98, %112 : vector<8x4xi32>
      %cst_66 = arith.constant 0.000000e+00 : f32
      %114 = vector.shape_cast %90 : vector<8x1xf32> to vector<8x1xf32>
      %115 = vector.broadcast %114 : vector<8x1xf32> to vector<8x4xf32>
      %116 = vector.broadcast %cst_66 : f32 to vector<8x4xf32>
      %117 = arith.select %113, %115, %116 : vector<8x4xi1>, vector<8x4xf32>
      %118 = arith.addf %111, %117 : vector<8x4xf32>
      %c3_i32 = arith.constant 3 : i32
      %119 = vector.broadcast %c3_i32 : i32 to vector<8x4xi32>
      %120 = arith.cmpi eq, %98, %119 : vector<8x4xi32>
      %cst_67 = arith.constant 0.000000e+00 : f32
      %121 = vector.shape_cast %97 : vector<8x1xf32> to vector<8x1xf32>
      %122 = vector.broadcast %121 : vector<8x1xf32> to vector<8x4xf32>
      %123 = vector.broadcast %cst_67 : f32 to vector<8x4xf32>
      %124 = arith.select %120, %122, %123 : vector<8x4xi1>, vector<8x4xf32>
      %125 = arith.addf %118, %124 : vector<8x4xf32>
      %c0_68 = arith.constant 0 : index
      %c0_69 = arith.constant 0 : index
      %126 = vector.load %arg3[%c0_68, %c0_69] : memref<8x4xf32, #tpu.memory_space<vmem>>, vector<8x4xf32>
      tpu.vector_store %arg3[%c0_68, %c0_69], %125 {strides = array<i32>} : memref<8x4xf32, #tpu.memory_space<vmem>>, vector<8x4xf32>,
    } else {
    }
    return
  }
  func.func @transform_0(%arg0: i32, %arg1: i32) -> (i32, i32, i32) {
    %c0_i32 = arith.constant 0 : i32
    %c0_i32_0 = arith.constant 0 : i32
    return %arg1, %arg0, %c0_i32 : i32, i32, i32
  }
  func.func @transform_1(%arg0: i32, %arg1: i32) -> (i32, i32) {
    %c0_i32 = arith.constant 0 : i32
    %c0_i32_0 = arith.constant 0 : i32
    return %arg0, %c0_i32 : i32, i32
  }
}

</mosaic_0001>

<bundles_post_ra>
// kernel: tpu_custom_call.1
= control target key start
LH: loop header
LB: loop body
LE: loop exit
PB: predicated region body
PF: predicated region fallthrough
CT: control target
= control target key end

     0   :  { %6 = vsyncpa [#allocation10], 0  ;;  %s305_s9 = smov [#allocation9]   ;;  %s306_s11 = smov 128   ;;  %s393_s0 = inlined_call_operand.hbm [shape: f32[4,8,8], index: 0, kind: input, shape index: {}]   ;;  %s394_s1 = inlined_call_operand.vmem [shape: f32[8,4], index: 1, kind: output, shape index: {}]  }
   0x1   :  { %s11_s8 = sshll.u32 %s393_s0, 4  ;;  %s13_s10 = sshll.u32 %s305_s9, 4  ;;  %s12_s8 = int_to_ptr.hbm [resolvable:$true] %s11_s8  ;;  %s14_s10 = int_to_ptr.vmem [resolvable:$true] %s13_s10 }
   0x2   :  { %s307_s12 = smov 8  }
   0x3   :  { %19 = dma.hbm_to_vmem [thread:$0]  %s12_s8, 512, %s14_s10, [#allocation10], %s306_s11, %s306_s11, %s307_s12  }
   0x4   :  { %303 = dma.done.wait [#allocation10], 512  }
   0x5   :  { %304 = vsyncadd [#allocation10], 4294966784  ;;  %vm32_vm0 = vcmask 64512   ;;  %v25_v0 = vld [vmem:[#allocation9 + $0x8] sm:$0xff]  ;;  %v324_v1 = vld [vmem:[#allocation9] sm:$0xff]  ;;  %vm45_vm1 = vcmask 7168  }
   0x6   :  { %v326_v2 = vld [vmem:[#allocation9 + $0x18] sm:$0xff]  ;;  %v65_v3 = vsel %vm32_vm0, %v25_v0, 0.0  ;;  %33 = vst.msk [vmem:[#allocation2] sm:$0xff] %vm32_vm0, %v324_v1  ;;  %v34_v4 = vsel %vm32_vm0, %v324_v1, 0.0  ;;  %v335_v6 = vld [vmem:[#allocation9 + $0x10] sm:$0xff]  ;;  %v308_v23 = vmov 0.0  }
   0x7   :  { %v71_v5 = vsel %vm32_vm0, %v326_v2, 0.0  ;;  %66 = vadd.xlane.f32.xlu1 %v65_v3  ;;  %35 = vadd.xlane.f32.xlu0 %v34_v4  ;;  %v68_v7 = vsel %vm32_vm0, %v335_v6, 0.0  ;;  %47 = vst.msk [vmem:[#allocation4] sm:$0xff] %vm32_vm0, %v308_v23  ;;  %v309_v26 = vmov 8.0   ;;  %v310_v42 = vmov 0  }
   0x8   :  { %72 = vadd.xlane.f32.xlu2 %v71_v5  ;;  %277 = vrcp.f32 %v309_v26  ;;  %48 = vst.msk [vmem:[#allocation5] sm:$0xff] %vm45_vm1, %v308_v23  ;;  %274 = vset.pattern.permute.xlu1 %v310_v42  ;;  %vm261_vm7 = vcmask 31744  }
   0x9   :  { %49 = vst.msk [vmem:[#allocation6] sm:$0xff] %vm45_vm1, %v308_v23  ;;  %276 = vset.pattern.permute.xlu2 %v310_v42  ;;  %275 = vset.pattern.permute.xlu0 %v310_v42 }
   0xa   :  { %50 = vst.msk [vmem:[#allocation7] sm:$0xff] %vm45_vm1, %v308_v23 }
   0xb   :  { %51 = vst.msk [vmem:[#allocation8] sm:$0xff] %vm45_vm1, %v308_v23 }
   0xd   :  { %v339_v8 = vld [vmem:[#allocation2] sm:$0xff] }
   0xe   :  { %v125_v9 = vsub.f32 %v324_v1, %v339_v8  ;;  %v126_v12 = vsub.f32 %v25_v0, %v339_v8  ;;  %v127_v16 = vsub.f32 %v335_v6, %v339_v8  ;;  %v352_v20 = vsub.f32 %v326_v2, %v339_v8  ;;  %v278_v28 = vpop.eup %277  ;;  %v133_v29 = vld [vmem:[#allocation4] sm:$0xff] }
   0xf   :  { %69 = vadd.xlane.f32.xlu1 %v68_v7  ;;  %63 = vadd.xlane.f32.xlu0 %v34_v4  ;;  %v38_v31 = vmul.f32 8.0, %v278_v28  ;;  %vm42_vm2 = vweird.f32 %v278_v28 }
  0x10   :  { %v144_v10 = vmul.f32 %v125_v9, %v125_v9  ;;  %v135_v13 = vsel %vm32_vm0, %v126_v12, 0.0  ;;  %v134_v14 = vsel %vm32_vm0, %v125_v9, 0.0  ;;  %v145_v15 = vmul.f32 %v126_v12, %v126_v12 }
  0x11   :  { %v136_v17 = vadd.f32 %v135_v13, %v134_v14  ;;  %v146_v19 = vmul.f32 %v127_v16, %v127_v16  ;;  %v137_v22 = vsel %vm32_vm0, %v127_v16, 0.0  ;;  %v139_v25 = vsel %vm32_vm0, %v352_v20, 0.0  ;;  %v174_v13 = vld [vmem:[#allocation7] sm:$0xff] }
  0x12   :  { %v148_v11 = vsel %vm32_vm0, %v144_v10, 0.0  ;;  %v151_v18 = vsel %vm32_vm0, %v145_v15, 0.0  ;;  %v39_v32 = vsub.f32 1.0, %v38_v31 }
  0x13   :  { %152 = vadd.xlane.f32.xlu2 %v151_v18  ;;  %v154_v21 = vsel %vm32_vm0, %v146_v19, 0.0  ;;  %v138_v24 = vadd.f32 %v137_v22, %v136_v17  ;;  %v147_v17 = vmul.f32 %v352_v20, %v352_v20  ;;  %v184_v19 = vld [vmem:[#allocation8] sm:$0xff] }
  0x14   :  { %v40_v33 = vmul.f32 %v278_v28, %v39_v32 }
  0x15   :  { %v140_v27 = vadd.f32 %v139_v25, %v138_v24  ;;  %v157_v25 = vsel %vm32_vm0, %v147_v17, 0.0 }
  0x16   :  { %v41_v34 = vadd.f32 %v278_v28, %v40_v33 }
  0x17   :  { %149 = vadd.xlane.f32.xlu1 %v148_v11  ;;  %v141_v30 = vadd.f32 %v140_v27, %v133_v29 }
  0x18   :  { %v43_v35 = vsel %vm42_vm2, %v278_v28, %v41_v34 }
  0x19   :  { %142 = vst.msk [vmem:[#allocation4] sm:$0xff] %vm32_vm0, %v141_v30 }
  0x1f   :  { %155 = vadd.xlane.f32.xlu1 %v154_v21 }
  0x7a   :  { %v67_v36 = vpop.xlane.xlu1 %66  ;;  %v36_v37 = vpop.xlane.xlu0 %35 }
  0x7b   :  { %v82_v38 = vmul.f32 %v67_v36, %v43_v35  ;;  %v44_v39 = vmul.f32 %v43_v35, %v36_v37  ;;  %v73_v41 = vpop.xlane.xlu2 %72 }
  0x7c   :  { %v84_v44 = vmul.f32 %v73_v41, %v43_v35 }
  0x7d   :  { %v86_v40 = vsub.f32 %v25_v0, %v82_v38  ;;  %46 = vst.msk [vmem:[#allocation3] sm:$0xff] %vm45_vm1, %v44_v39 }
  0x7e   :  { %v88_v10 = vsub.f32 %v326_v2, %v84_v44  ;;  %v201_v2 = vld [vmem:[#allocation4] sm:$0xff] }
  0x7f   :  { %v103_v43 = vmul.f32 %v86_v40, %v86_v40  ;;  %v202_v26 = vmul.f32 0.25, %v201_v2 }
  0x80   :  { %v105_v23 = vmul.f32 %v88_v10, %v88_v10 }
  0x81   :  { %v109_v45 = vsel %vm32_vm0, %v103_v43, 0.0  ;;  %v216_v20 = vmul.f32 %v202_v26, %v202_v26 }
  0x82   :  { %v70_v46 = vpop.xlane.xlu1 %69  ;;  %110 = vadd.xlane.f32.xlu0 %v109_v45  ;;  %v64_v47 = vpop.xlane.xlu0 %63  ;;  %v115_v27 = vsel %vm32_vm0, %v105_v23, 0.0 }
  0x83   :  { %v83_v48 = vmul.f32 %v70_v46, %v43_v35  ;;  %v81_v49 = vmul.f32 %v64_v47, %v43_v35  ;;  %v217_v30 = vsel %vm32_vm0, %v216_v20, 0.0  ;;  %v143_v46 = vld [vmem:[#allocation6] sm:$0xff] }
  0x84   :  { %v165_v50 = vld [vmem:[#allocation3] sm:$0xff] }
  0x85   :  { %v169_v51 = vsub.f32 %v84_v44, %v165_v50  ;;  %v87_v52 = vsub.f32 %v335_v6, %v83_v48  ;;  %v168_v53 = vsub.f32 %v83_v48, %v165_v50  ;;  %v167_v54 = vsub.f32 %v82_v38, %v165_v50 }
  0x86   :  { %v85_v55 = vsub.f32 %v324_v1, %v81_v49  ;;  %v166_v56 = vsub.f32 %v81_v49, %v165_v50  ;;  %v153_v38 = vpop.xlane.xlu2 %152 }
  0x87   :  { %v187_v57 = vmul.f32 %v168_v53, %v168_v53  ;;  %v176_v58 = vsel %vm45_vm1, %v167_v54, 0.0  ;;  %v186_v59 = vmul.f32 %v167_v54, %v167_v54  ;;  %v188_v62 = vmul.f32 %v169_v51, %v169_v51 }
  0x88   :  { %v175_v60 = vsel %vm45_vm1, %v166_v56, 0.0  ;;  %v185_v61 = vmul.f32 %v166_v56, %v166_v56  ;;  %v104_v0 = vmul.f32 %v87_v52, %v87_v52  ;;  %v178_v3 = vsel %vm45_vm1, %v168_v53, 0.0 }
  0x89   :  { %v177_v63 = vadd.f32 %v176_v58, %v175_v60  ;;  %v190_v4 = vsel %vm45_vm1, %v186_v59, 0.0  ;;  %v102_v6 = vmul.f32 %v85_v55, %v85_v55  ;;  %v180_v11 = vsel %vm45_vm1, %v169_v51, 0.0 }
  0x8a   :  { %v189_v5 = vsel %vm45_vm1, %v185_v61, 0.0  ;;  %v112_v9 = vsel %vm32_vm0, %v104_v0, 0.0  ;;  %v192_v12 = vsel %vm45_vm1, %v187_v57, 0.0  ;;  %v194_v18 = vsel %vm45_vm1, %v188_v62, 0.0  ;;  %v150_v39 = vpop.xlane.xlu1 %149 }
  0x8b   :  { %v179_v7 = vadd.f32 %v178_v3, %v177_v63  ;;  %v191_v1 = vadd.f32 %v190_v4, %v189_v5  ;;  %113 = vadd.xlane.f32.xlu0 %v112_v9  ;;  %v106_v14 = vsel %vm32_vm0, %v102_v6, 0.0  ;;  %v160_v42 = vadd.f32 %v153_v38, %v150_v39 }
  0x8c   :  { %107 = vadd.xlane.f32.xlu2 %v106_v14  ;;  %v204_v55 = vadd.f32 %v202_v26, %v339_v8  ;;  %v233_v3 = vlaneseq }
  0x8d   :  { %v181_v15 = vadd.f32 %v180_v11, %v179_v7  ;;  %v193_v16 = vadd.f32 %v192_v12, %v191_v1 }
  0x8e   :  { %v234_v5 = vand.u32 127, %v233_v3 }
  0x8f   :  { %v182_v21 = vadd.f32 %v181_v15, %v174_v13  ;;  %v195_v22 = vadd.f32 %v194_v18, %v193_v16 }
  0x90   :  { %vm242_vm3 = vcmp.eq.s32.totalorder %v234_v5, 1  ;;  %vm235_vm4 = vcmp.eq.s32.totalorder %v234_v5, 0  ;;  %vm250_vm5 = vcmp.eq.s32.totalorder %v234_v5, 2  ;;  %vm258_vm6 = vcmp.eq.s32.totalorder %v234_v5, 3 }
  0x91   :  { %183 = vst.msk [vmem:[#allocation7] sm:$0xff] %vm45_vm1, %v182_v21  ;;  %v196_v24 = vadd.f32 %v195_v22, %v184_v19 }
  0x92   :  { %v156_v43 = vpop.xlane.xlu1 %155 }
  0x93   :  { %197 = vst.msk [vmem:[#allocation8] sm:$0xff] %vm45_vm1, %v196_v24  ;;  %158 = vadd.xlane.f32.xlu0 %v157_v25  ;;  %v161_v45 = vadd.f32 %v160_v42, %v156_v43 }
  0x94   :  { %116 = vadd.xlane.f32.xlu2 %v115_v27 }
  0x98   :  { %v205_v28 = vld [vmem:[#allocation7] sm:$0xff] }
  0x99   :  { %v206_v29 = vmul.f32 0.25, %v205_v28 }
  0x9a   :  { %v210_v34 = vld [vmem:[#allocation8] sm:$0xff] }
  0x9b   :  { %v208_v31 = vadd.f32 %v206_v29, %v165_v50  ;;  %v211_v32 = vmul.f32 4.0, %v206_v29  ;;  %v101_v50 = vld [vmem:[#allocation5] sm:$0xff] }
  0x9c   :  { %218 = vadd.xlane.f32.xlu2 %v217_v30 }
  0x9d   :  { %224 = vperm.xlu1 %274, %v208_v31   ;;  %v212_v33 = vmul.f32 %v211_v32, %v206_v29 }
  0x9f   :  { %v213_v35 = vsub.f32 %v210_v34, %v212_v33 }
  0xa1   :  { %v214_v36 = vmul.f32 8.0, %v213_v35 }
  0xb4   :  { %245 = vperm.xlu2 %276, %v214_v36  }
  0xf5   :  { %v111_v37 = vpop.xlane.xlu0 %110 }
  0xfe   :  { %v114_v40 = vpop.xlane.xlu0 %113 }
  0xff   :  { %v108_v41 = vpop.xlane.xlu2 %107 }
 0x100   :  { %v118_v44 = vadd.f32 %v111_v37, %v108_v41 }
 0x102   :  { %v119_v48 = vadd.f32 %v118_v44, %v114_v40 }
 0x106   :  { %v159_v47 = vpop.xlane.xlu0 %158 }
 0x107   :  { %v162_v49 = vadd.f32 %v161_v45, %v159_v47  ;;  %v117_v51 = vpop.xlane.xlu2 %116 }
 0x108   :  { %v120_v52 = vadd.f32 %v119_v48, %v117_v51 }
 0x109   :  { %v163_v53 = vadd.f32 %v162_v49, %v143_v46 }
 0x10a   :  { %v121_v54 = vadd.f32 %v120_v52, %v101_v50 }
 0x10b   :  { %164 = vst.msk [vmem:[#allocation6] sm:$0xff] %vm45_vm1, %v163_v53 }
 0x10c   :  { %123 = vst.msk [vmem:[#allocation5] sm:$0xff] %vm45_vm1, %v121_v54 }
 0x10f   :  { %v225_v56 = vpop.permute.xlu1 %224  ;;  %v219_v57 = vpop.xlane.xlu2 %218 }
 0x110   :  { %v227_v58 = vsub.f32 %v204_v55, %v225_v56  ;;  %v220_v59 = vmul.f32 4.0, %v219_v57 }
 0x112   :  { %v228_v60 = vmul.f32 %v227_v58, %v227_v58  ;;  %v215_v61 = vld [vmem:[#allocation6] sm:$0xff] }
 0x113   :  { %v221_v62 = vsub.f32 %v215_v61, %v220_v59  ;;  %v209_v63 = vld [vmem:[#allocation5] sm:$0xff] }
 0x114   :  { %v229_v0 = vsel %vm32_vm0, %v228_v60, 0.0  ;;  %238 = vperm.xlu0 %275, %v209_v63  }
 0x115   :  { %230 = vadd.xlane.f32.xlu1 %v229_v0  ;;  %253 = vperm.xlu2 %276, %v221_v62  }
 0x117   :  { %v246_v4 = vpop.permute.xlu2 %245 }
 0x118   :  { %v248_v7 = vsel %vm242_vm3, %v246_v4, 0.0 }
 0x16f   :  { %v254_v8 = vpop.permute.xlu2 %253 }
 0x170   :  { %v256_v12 = vsel %vm250_vm5, %v254_v8, 0.0 }
 0x186   :  { %v239_v6 = vpop.permute.xlu0 %238 }
 0x187   :  { %v241_v1 = vsel %vm235_vm4, %v239_v6, 0.0 }
 0x188   :  { %v231_v9 = vpop.xlane.xlu1 %230  ;;  %v249_v10 = vadd.f32 %v248_v7, %v241_v1 }
 0x189   :  { %v232_v11 = vmul.f32 4.0, %v231_v9 }
 0x18a   :  { %v257_v13 = vadd.f32 %v256_v12, %v249_v10 }
 0x18b   :  { %v259_v14 = vsel %vm258_vm6, %v232_v11, 0.0 }
 0x18c   :  { %v260_v15 = vadd.f32 %v259_v14, %v257_v13 }
 0x18e   :  { %262 = vst.msk [vmem:[%s394_s1] sm:$0xff] %vm261_vm7, %v260_v15 }
 0x18f   :  { %267 = vsyncpa [#allocation10], 1 }

</bundles_post_ra>
